<compile_context>
chip_gen: v7x
topology: tpu7x:2x2x1
jax: 0.10.0
libtpu: 0.0.40
codegen_flags: <defaults>
</compile_context>

<pallas_src>
import functools

import jax
import jax.numpy as jnp
from jax import lax
from jax.experimental import pallas as pl
from jax.experimental.pallas import tpu as pltpu


def _round_up(x, m):
    return ((x + m - 1) // m) * m


def _unet_down_kernel(x_ref, w_ref, m_ref, o_ref, *, Ho, Wo, T_pad,
                      normalize, neg_slope, eps):
    # x_ref: (1, 4, Cin_p, S_pad) bf16 -- stride-2 phase-split padded input, spatial flattened
    # w_ref: (16, tC, Cin_p)      bf16 -- per-(kh,kw) weight slices
    # m_ref: (1, T_pad)           f32  -- 1.0 on valid output columns, 0.0 on junk/padded columns
    # o_ref: (1, tC, T_pad)       f32  -- row layout: (Ho rows) x (Wo valid + 1 junk), then lane pad
    tC = w_ref.shape[1]

    # Conv as 16 shifted matmuls on the MXU (bf16 operands, f32 accumulation).
    acc = jnp.zeros((tC, T_pad), dtype=jnp.float32)
    for kh in range(4):
        for kw in range(4):
            p = (kh % 2) * 2 + (kw % 2)                # which stride-2 phase grid
            off = (kh // 2) * (Wo + 1) + (kw // 2)     # shift in flattened phase coordinates
            w_kk = w_ref[kh * 4 + kw]                  # (tC, Cin_p) bf16
            xs = x_ref[0, p, :, pl.ds(off, T_pad)]     # (Cin_p, T_pad) bf16, static slice
            acc = acc + jnp.dot(w_kk, xs, preferred_element_type=jnp.float32)

    if normalize:
        # InstanceNorm2d (affine=False, biased variance, eps) over valid spatial positions only.
        mask = m_ref[...]                              # (1, T_pad)
        inv_cnt = 1.0 / float(Ho * Wo)
        mean = jnp.sum(acc * mask, axis=1, keepdims=True) * inv_cnt
        centered = acc - mean
        d = centered * mask
        var = jnp.sum(d * d, axis=1, keepdims=True) * inv_cnt
        y = centered * lax.rsqrt(var + eps)
    else:
        y = acc

    # LeakyReLU(0.2) -- single fused, unmasked, lane-dense f32 store.
    o_ref[0] = jnp.where(y >= 0.0, y, neg_slope * y)


def unet_down(x, weight, normalize=True, negative_slope=0.2, eps=1e-5):
    """x: (N, Cin, H, W) f32; weight: (Cout, Cin, 4, 4) f32 -> (N, Cout, H//2, W//2) f32."""
    N, Cin, H, W = x.shape
    Cout = weight.shape[0]
    assert weight.shape == (Cout, Cin, 4, 4)
    assert H % 2 == 0 and W % 2 == 0
    Ho, Wo = H // 2, W // 2

    Cin_p = max(8, _round_up(Cin, 8))          # pad contraction channels to a multiple of 8
    S = (Ho + 1) * (Wo + 1)                    # flattened spatial size of each phase grid
    T = Ho * (Wo + 1)                          # valid-row span: Ho rows of (Wo valid + 1 junk)
    T_pad = _round_up(T, 128)                  # lane-dense output width
    S_pad = _round_up(Wo + 2 + T_pad, 128)     # room for the largest shift + lane alignment
    assert S_pad >= S

    # Conv padding + channel zero-pad, then stride-2 phase de-interleave.
    # One HBM pass, 1x-sized relayout of the input (no im2col materialization).
    x_pad = jnp.pad(x, ((0, 0), (0, Cin_p - Cin), (1, 1), (1, 1)))
    xr = x_pad.reshape(N, Cin_p, Ho + 1, 2, Wo + 1, 2)
    xr = jnp.transpose(xr, (0, 3, 5, 1, 2, 4))           # (N, 2, 2, Cin_p, Ho+1, Wo+1)
    x_ph = xr.reshape(N, 4, Cin_p, S)
    x_ph = jnp.pad(x_ph, ((0, 0), (0, 0), (0, 0), (0, S_pad - S))).astype(jnp.bfloat16)

    # Weight -> (16, Cout, Cin_p), kidx = kh*4 + kw. Zero channel-pad keeps results exact.
    w = jnp.pad(weight, ((0, 0), (0, Cin_p - Cin), (0, 0), (0, 0)))
    w = jnp.transpose(w, (2, 3, 0, 1)).reshape(16, Cout, Cin_p).astype(jnp.bfloat16)

    # Validity mask over the flattened output columns (junk per-row column + lane padding = 0).
    idx = jnp.arange(T_pad, dtype=jnp.int32)
    mask = ((idx < T) & (idx % (Wo + 1) < Wo)).astype(jnp.float32).reshape(1, T_pad)

    # Cout tile (second parallel grid axis).
    tC = 64 if (Cout % 64 == 0) else Cout
    n_ct = Cout // tC

    kernel = functools.partial(
        _unet_down_kernel, Ho=Ho, Wo=Wo, T_pad=T_pad, normalize=normalize,
        neg_slope=negative_slope, eps=eps)

    out = pl.pallas_call(
        kernel,
        out_shape=jax.ShapeDtypeStruct((N, Cout, T_pad), jnp.float32),
        grid_spec=pltpu.PrefetchScalarGridSpec(
            num_scalar_prefetch=0,
            grid=(N, n_ct),
            in_specs=[
                pl.BlockSpec((1, 4, Cin_p, S_pad), lambda n, ct: (n, 0, 0, 0)),
                pl.BlockSpec((16, tC, Cin_p), lambda n, ct: (0, ct, 0)),
                pl.BlockSpec((1, T_pad), lambda n, ct: (0, 0)),
            ],
            out_specs=pl.BlockSpec((1, tC, T_pad), lambda n, ct: (n, ct, 0)),
        ),
        compiler_params=pltpu.CompilerParams(
            dimension_semantics=("parallel", "parallel"),
            vmem_limit_bytes=64 * 1024 * 1024,
        ),
    )(x_ph, w, mask)

    # Strip lane padding, then the junk column of each row (XLA fuses these thin slices).
    out = out[:, :, :T].reshape(N, Cout, Ho, Wo + 1)[:, :, :, :Wo]
    return out


def _reference(x, weight, normalize=True, negative_slope=0.2, eps=1e-5):
    y = lax.conv_general_dilated(
        x, weight, window_strides=(2, 2), padding=((1, 1), (1, 1)),
        dimension_numbers=("NCHW", "OIHW", "NCHW"))
    if normalize:
        mean = jnp.mean(y, axis=(2, 3), keepdims=True)
        var = jnp.mean((y - mean) ** 2, axis=(2, 3), keepdims=True)
        y = (y - mean) * lax.rsqrt(var + eps)
    return jnp.where(y >= 0, y, negative_slope * y)


if __name__ == "__main__":
    key = jax.random.PRNGKey(0)
    kx, kw = jax.random.split(key)

    N, Cin, H, W = 2, 4, 16, 16
    Cout = 8  # UNetDown(in_size=4, out_size=8)

    x = jax.random.normal(kx, (N, Cin, H, W), dtype=jnp.float32)
    weight = jax.random.normal(kw, (Cout, Cin, 4, 4), dtype=jnp.float32) * 0.1

    out = jax.block_until_ready(unet_down(x, weight))
    ref = jax.block_until_ready(_reference(x, weight))

    assert out.shape == (N, Cout, H // 2, W // 2)
    # bf16 MXU operands with f32 accumulation -> compare at bf16-level tolerance.
    assert jnp.allclose(out, ref, atol=5e-2, rtol=5e-2), float(jnp.max(jnp.abs(out - ref)))

    # TODO(synk): nn.Dropout is only active with dropout>0 in training mode; the default
    # UNetDown(dropout=0.0) forward has no dropout, so it is intentionally omitted.
    print("KERNEL_OK")
</pallas_src>

<mosaic_0001>
module attributes {stable_mosaic.version = 11 : i64} {
  func.func @_unet_down_kernel(%arg0: i32, %arg1: i32, %arg2: memref<1x4x8x256xbf16, #tpu.memory_space<vmem>>, %arg3: memref<16x8x8xbf16, #tpu.memory_space<vmem>>, %arg4: memref<1x128xf32, #tpu.memory_space<vmem>>, %arg5: memref<1x8x128xf32, #tpu.memory_space<vmem>>) attributes {dimension_semantics = [#tpu.dimension_semantics<parallel>, #tpu.dimension_semantics<parallel>], iteration_bounds = array<i64: 2, 1>, scalar_prefetch = 0 : i64, scratch_operands = 0 : i64, tpu.core_type = #tpu.core_type<tc>, window_params = [{transform_indices = @transform_0, window_bounds = array<i64: 1, 4, 8, 256>}, {transform_indices = @transform_1, window_bounds = array<i64: 16, 8, 8>}, {pipeline_mode = #tpu.pipeline_mode<synchronous>, transform_indices = @transform_2, window_bounds = array<i64: 1, 128>}, {transform_indices = @transform_3, window_bounds = array<i64: 1, 8, 128>}]} {
    %cst = arith.constant 0.000000e+00 : f32
    %0 = vector.broadcast %cst : f32 to vector<8x128xf32>
    %c0 = arith.constant 0 : index
    %c0_0 = arith.constant 0 : index
    %c0_1 = arith.constant 0 : index
    %1 = vector.load %arg3[%c0, %c0_0, %c0_1] : memref<16x8x8xbf16, #tpu.memory_space<vmem>>, vector<1x8x8xbf16>
    %2 = vector.shape_cast %1 : vector<1x8x8xbf16> to vector<8x8xbf16>
    %c0_2 = arith.constant 0 : index
    %c0_3 = arith.constant 0 : index
    %c0_4 = arith.constant 0 : index
    %c0_5 = arith.constant 0 : index
    %3 = vector.load %arg2[%c0_2, %c0_3, %c0_4, %c0_5] : memref<1x4x8x256xbf16, #tpu.memory_space<vmem>>, vector<1x1x8x128xbf16>
    %4 = vector.shape_cast %3 : vector<1x1x8x128xbf16> to vector<8x128xbf16>
    %cst_6 = arith.constant dense<0.000000e+00> : vector<8x128xf32>
    %5 = tpu.matmul %2, %4, %cst_6 {dimension_numbers = #tpu.dot_dimension_numbers<[1], [0], [0], [1], [0, 0, 1, 1], [], []>} : vector<8x8xbf16>, vector<8x128xbf16>, vector<8x128xf32> -> vector<8x128xf32>
    %6 = arith.addf %0, %5 : vector<8x128xf32>
    %c1 = arith.constant 1 : index
    %c0_7 = arith.constant 0 : index
    %c0_8 = arith.constant 0 : index
    %7 = vector.load %arg3[%c1, %c0_7, %c0_8] : memref<16x8x8xbf16, #tpu.memory_space<vmem>>, vector<1x8x8xbf16>
    %8 = vector.shape_cast %7 : vector<1x8x8xbf16> to vector<8x8xbf16>
    %c0_9 = arith.constant 0 : index
    %c1_10 = arith.constant 1 : index
    %c0_11 = arith.constant 0 : index
    %c0_12 = arith.constant 0 : index
    %9 = vector.load %arg2[%c0_9, %c1_10, %c0_11, %c0_12] : memref<1x4x8x256xbf16, #tpu.memory_space<vmem>>, vector<1x1x8x128xbf16>
    %10 = vector.shape_cast %9 : vector<1x1x8x128xbf16> to vector<8x128xbf16>
    %cst_13 = arith.constant dense<0.000000e+00> : vector<8x128xf32>
    %11 = tpu.matmul %8, %10, %cst_13 {dimension_numbers = #tpu.dot_dimension_numbers<[1], [0], [0], [1], [0, 0, 1, 1], [], []>} : vector<8x8xbf16>, vector<8x128xbf16>, vector<8x128xf32> -> vector<8x128xf32>
    %12 = arith.addf %6, %11 : vector<8x128xf32>
    %c2 = arith.constant 2 : index
    %c0_14 = arith.constant 0 : index
    %c0_15 = arith.constant 0 : index
    %13 = vector.load %arg3[%c2, %c0_14, %c0_15] : memref<16x8x8xbf16, #tpu.memory_space<vmem>>, vector<1x8x8xbf16>
    %14 = vector.shape_cast %13 : vector<1x8x8xbf16> to vector<8x8xbf16>
    %c0_16 = arith.constant 0 : index
    %c0_17 = arith.constant 0 : index
    %c0_18 = arith.constant 0 : index
    %c1_19 = arith.constant 1 : index
    %15 = vector.load %arg2[%c0_16, %c0_17, %c0_18, %c1_19] : memref<1x4x8x256xbf16, #tpu.memory_space<vmem>>, vector<1x1x8x128xbf16>
    %16 = vector.shape_cast %15 : vector<1x1x8x128xbf16> to vector<8x128xbf16>
    %cst_20 = arith.constant dense<0.000000e+00> : vector<8x128xf32>
    %17 = tpu.matmul %14, %16, %cst_20 {dimension_numbers = #tpu.dot_dimension_numbers<[1], [0], [0], [1], [0, 0, 1, 1], [], []>} : vector<8x8xbf16>, vector<8x128xbf16>, vector<8x128xf32> -> vector<8x128xf32>
    %18 = arith.addf %12, %17 : vector<8x128xf32>
    %c3 = arith.constant 3 : index
    %c0_21 = arith.constant 0 : index
    %c0_22 = arith.constant 0 : index
    %19 = vector.load %arg3[%c3, %c0_21, %c0_22] : memref<16x8x8xbf16, #tpu.memory_space<vmem>>, vector<1x8x8xbf16>
    %20 = vector.shape_cast %19 : vector<1x8x8xbf16> to vector<8x8xbf16>
    %c0_23 = arith.constant 0 : index
    %c1_24 = arith.constant 1 : index
    %c0_25 = arith.constant 0 : index
    %c1_26 = arith.constant 1 : index
    %21 = vector.load %arg2[%c0_23, %c1_24, %c0_25, %c1_26] : memref<1x4x8x256xbf16, #tpu.memory_space<vmem>>, vector<1x1x8x128xbf16>
    %22 = vector.shape_cast %21 : vector<1x1x8x128xbf16> to vector<8x128xbf16>
    %cst_27 = arith.constant dense<0.000000e+00> : vector<8x128xf32>
    %23 = tpu.matmul %20, %22, %cst_27 {dimension_numbers = #tpu.dot_dimension_numbers<[1], [0], [0], [1], [0, 0, 1, 1], [], []>} : vector<8x8xbf16>, vector<8x128xbf16>, vector<8x128xf32> -> vector<8x128xf32>
    %24 = arith.addf %18, %23 : vector<8x128xf32>
    %c4 = arith.constant 4 : index
    %c0_28 = arith.constant 0 : index
    %c0_29 = arith.constant 0 : index
    %25 = vector.load %arg3[%c4, %c0_28, %c0_29] : memref<16x8x8xbf16, #tpu.memory_space<vmem>>, vector<1x8x8xbf16>
    %26 = vector.shape_cast %25 : vector<1x8x8xbf16> to vector<8x8xbf16>
    %c0_30 = arith.constant 0 : index
    %c2_31 = arith.constant 2 : index
    %c0_32 = arith.constant 0 : index
    %c0_33 = arith.constant 0 : index
    %27 = vector.load %arg2[%c0_30, %c2_31, %c0_32, %c0_33] : memref<1x4x8x256xbf16, #tpu.memory_space<vmem>>, vector<1x1x8x128xbf16>
    %28 = vector.shape_cast %27 : vector<1x1x8x128xbf16> to vector<8x128xbf16>
    %cst_34 = arith.constant dense<0.000000e+00> : vector<8x128xf32>
    %29 = tpu.matmul %26, %28, %cst_34 {dimension_numbers = #tpu.dot_dimension_numbers<[1], [0], [0], [1], [0, 0, 1, 1], [], []>} : vector<8x8xbf16>, vector<8x128xbf16>, vector<8x128xf32> -> vector<8x128xf32>
    %30 = arith.addf %24, %29 : vector<8x128xf32>
    %c5 = arith.constant 5 : index
    %c0_35 = arith.constant 0 : index
    %c0_36 = arith.constant 0 : index
    %31 = vector.load %arg3[%c5, %c0_35, %c0_36] : memref<16x8x8xbf16, #tpu.memory_space<vmem>>, vector<1x8x8xbf16>
    %32 = vector.shape_cast %31 : vector<1x8x8xbf16> to vector<8x8xbf16>
    %c0_37 = arith.constant 0 : index
    %c3_38 = arith.constant 3 : index
    %c0_39 = arith.constant 0 : index
    %c0_40 = arith.constant 0 : index
    %33 = vector.load %arg2[%c0_37, %c3_38, %c0_39, %c0_40] : memref<1x4x8x256xbf16, #tpu.memory_space<vmem>>, vector<1x1x8x128xbf16>
    %34 = vector.shape_cast %33 : vector<1x1x8x128xbf16> to vector<8x128xbf16>
    %cst_41 = arith.constant dense<0.000000e+00> : vector<8x128xf32>
    %35 = tpu.matmul %32, %34, %cst_41 {dimension_numbers = #tpu.dot_dimension_numbers<[1], [0], [0], [1], [0, 0, 1, 1], [], []>} : vector<8x8xbf16>, vector<8x128xbf16>, vector<8x128xf32> -> vector<8x128xf32>
    %36 = arith.addf %30, %35 : vector<8x128xf32>
    %c6 = arith.constant 6 : index
    %c0_42 = arith.constant 0 : index
    %c0_43 = arith.constant 0 : index
    %37 = vector.load %arg3[%c6, %c0_42, %c0_43] : memref<16x8x8xbf16, #tpu.memory_space<vmem>>, vector<1x8x8xbf16>
    %38 = vector.shape_cast %37 : vector<1x8x8xbf16> to vector<8x8xbf16>
    %c0_44 = arith.constant 0 : index
    %c2_45 = arith.constant 2 : index
    %c0_46 = arith.constant 0 : index
    %c1_47 = arith.constant 1 : index
    %39 = vector.load %arg2[%c0_44, %c2_45, %c0_46, %c1_47] : memref<1x4x8x256xbf16, #tpu.memory_space<vmem>>, vector<1x1x8x128xbf16>
    %40 = vector.shape_cast %39 : vector<1x1x8x128xbf16> to vector<8x128xbf16>
    %cst_48 = arith.constant dense<0.000000e+00> : vector<8x128xf32>
    %41 = tpu.matmul %38, %40, %cst_48 {dimension_numbers = #tpu.dot_dimension_numbers<[1], [0], [0], [1], [0, 0, 1, 1], [], []>} : vector<8x8xbf16>, vector<8x128xbf16>, vector<8x128xf32> -> vector<8x128xf32>
    %42 = arith.addf %36, %41 : vector<8x128xf32>
    %c7 = arith.constant 7 : index
    %c0_49 = arith.constant 0 : index
    %c0_50 = arith.constant 0 : index
    %43 = vector.load %arg3[%c7, %c0_49, %c0_50] : memref<16x8x8xbf16, #tpu.memory_space<vmem>>, vector<1x8x8xbf16>
    %44 = vector.shape_cast %43 : vector<1x8x8xbf16> to vector<8x8xbf16>
    %c0_51 = arith.constant 0 : index
    %c3_52 = arith.constant 3 : index
    %c0_53 = arith.constant 0 : index
    %c1_54 = arith.constant 1 : index
    %45 = vector.load %arg2[%c0_51, %c3_52, %c0_53, %c1_54] : memref<1x4x8x256xbf16, #tpu.memory_space<vmem>>, vector<1x1x8x128xbf16>
    %46 = vector.shape_cast %45 : vector<1x1x8x128xbf16> to vector<8x128xbf16>
    %cst_55 = arith.constant dense<0.000000e+00> : vector<8x128xf32>
    %47 = tpu.matmul %44, %46, %cst_55 {dimension_numbers = #tpu.dot_dimension_numbers<[1], [0], [0], [1], [0, 0, 1, 1], [], []>} : vector<8x8xbf16>, vector<8x128xbf16>, vector<8x128xf32> -> vector<8x128xf32>
    %48 = arith.addf %42, %47 : vector<8x128xf32>
    %c8 = arith.constant 8 : index
    %c0_56 = arith.constant 0 : index
    %c0_57 = arith.constant 0 : index
    %49 = vector.load %arg3[%c8, %c0_56, %c0_57] : memref<16x8x8xbf16, #tpu.memory_space<vmem>>, vector<1x8x8xbf16>
    %50 = vector.shape_cast %49 : vector<1x8x8xbf16> to vector<8x8xbf16>
    %c0_58 = arith.constant 0 : index
    %c0_59 = arith.constant 0 : index
    %c0_60 = arith.constant 0 : index
    %c9 = arith.constant 9 : index
    %51 = vector.load %arg2[%c0_58, %c0_59, %c0_60, %c9] : memref<1x4x8x256xbf16, #tpu.memory_space<vmem>>, vector<1x1x8x128xbf16>
    %52 = vector.shape_cast %51 : vector<1x1x8x128xbf16> to vector<8x128xbf16>
    %cst_61 = arith.constant dense<0.000000e+00> : vector<8x128xf32>
    %53 = tpu.matmul %50, %52, %cst_61 {dimension_numbers = #tpu.dot_dimension_numbers<[1], [0], [0], [1], [0, 0, 1, 1], [], []>} : vector<8x8xbf16>, vector<8x128xbf16>, vector<8x128xf32> -> vector<8x128xf32>
    %54 = arith.addf %48, %53 : vector<8x128xf32>
    %c9_62 = arith.constant 9 : index
    %c0_63 = arith.constant 0 : index
    %c0_64 = arith.constant 0 : index
    %55 = vector.load %arg3[%c9_62, %c0_63, %c0_64] : memref<16x8x8xbf16, #tpu.memory_space<vmem>>, vector<1x8x8xbf16>
    %56 = vector.shape_cast %55 : vector<1x8x8xbf16> to vector<8x8xbf16>
    %c0_65 = arith.constant 0 : index
    %c1_66 = arith.constant 1 : index
    %c0_67 = arith.constant 0 : index
    %c9_68 = arith.constant 9 : index
    %57 = vector.load %arg2[%c0_65, %c1_66, %c0_67, %c9_68] : memref<1x4x8x256xbf16, #tpu.memory_space<vmem>>, vector<1x1x8x128xbf16>
    %58 = vector.shape_cast %57 : vector<1x1x8x128xbf16> to vector<8x128xbf16>
    %cst_69 = arith.constant dense<0.000000e+00> : vector<8x128xf32>
    %59 = tpu.matmul %56, %58, %cst_69 {dimension_numbers = #tpu.dot_dimension_numbers<[1], [0], [0], [1], [0, 0, 1, 1], [], []>} : vector<8x8xbf16>, vector<8x128xbf16>, vector<8x128xf32> -> vector<8x128xf32>
    %60 = arith.addf %54, %59 : vector<8x128xf32>
    %c10 = arith.constant 10 : index
    %c0_70 = arith.constant 0 : index
    %c0_71 = arith.constant 0 : index
    %61 = vector.load %arg3[%c10, %c0_70, %c0_71] : memref<16x8x8xbf16, #tpu.memory_space<vmem>>, vector<1x8x8xbf16>
    %62 = vector.shape_cast %61 : vector<1x8x8xbf16> to vector<8x8xbf16>
    %c0_72 = arith.constant 0 : index
    %c0_73 = arith.constant 0 : index
    %c0_74 = arith.constant 0 : index
    %c10_75 = arith.constant 10 : index
    %63 = vector.load %arg2[%c0_72, %c0_73, %c0_74, %c10_75] : memref<1x4x8x256xbf16, #tpu.memory_space<vmem>>, vector<1x1x8x128xbf16>
    %64 = vector.shape_cast %63 : vector<1x1x8x128xbf16> to vector<8x128xbf16>
    %cst_76 = arith.constant dense<0.000000e+00> : vector<8x128xf32>
    %65 = tpu.matmul %62, %64, %cst_76 {dimension_numbers = #tpu.dot_dimension_numbers<[1], [0], [0], [1], [0, 0, 1, 1], [], []>} : vector<8x8xbf16>, vector<8x128xbf16>, vector<8x128xf32> -> vector<8x128xf32>
    %66 = arith.addf %60, %65 : vector<8x128xf32>
    %c11 = arith.constant 11 : index
    %c0_77 = arith.constant 0 : index
    %c0_78 = arith.constant 0 : index
    %67 = vector.load %arg3[%c11, %c0_77, %c0_78] : memref<16x8x8xbf16, #tpu.memory_space<vmem>>, vector<1x8x8xbf16>
    %68 = vector.shape_cast %67 : vector<1x8x8xbf16> to vector<8x8xbf16>
    %c0_79 = arith.constant 0 : index
    %c1_80 = arith.constant 1 : index
    %c0_81 = arith.constant 0 : index
    %c10_82 = arith.constant 10 : index
    %69 = vector.load %arg2[%c0_79, %c1_80, %c0_81, %c10_82] : memref<1x4x8x256xbf16, #tpu.memory_space<vmem>>, vector<1x1x8x128xbf16>
    %70 = vector.shape_cast %69 : vector<1x1x8x128xbf16> to vector<8x128xbf16>
    %cst_83 = arith.constant dense<0.000000e+00> : vector<8x128xf32>
    %71 = tpu.matmul %68, %70, %cst_83 {dimension_numbers = #tpu.dot_dimension_numbers<[1], [0], [0], [1], [0, 0, 1, 1], [], []>} : vector<8x8xbf16>, vector<8x128xbf16>, vector<8x128xf32> -> vector<8x128xf32>
    %72 = arith.addf %66, %71 : vector<8x128xf32>
    %c12 = arith.constant 12 : index
    %c0_84 = arith.constant 0 : index
    %c0_85 = arith.constant 0 : index
    %73 = vector.load %arg3[%c12, %c0_84, %c0_85] : memref<16x8x8xbf16, #tpu.memory_space<vmem>>, vector<1x8x8xbf16>
    %74 = vector.shape_cast %73 : vector<1x8x8xbf16> to vector<8x8xbf16>
    %c0_86 = arith.constant 0 : index
    %c2_87 = arith.constant 2 : index
    %c0_88 = arith.constant 0 : index
    %c9_89 = arith.constant 9 : index
    %75 = vector.load %arg2[%c0_86, %c2_87, %c0_88, %c9_89] : memref<1x4x8x256xbf16, #tpu.memory_space<vmem>>, vector<1x1x8x128xbf16>
    %76 = vector.shape_cast %75 : vector<1x1x8x128xbf16> to vector<8x128xbf16>
    %cst_90 = arith.constant dense<0.000000e+00> : vector<8x128xf32>
    %77 = tpu.matmul %74, %76, %cst_90 {dimension_numbers = #tpu.dot_dimension_numbers<[1], [0], [0], [1], [0, 0, 1, 1], [], []>} : vector<8x8xbf16>, vector<8x128xbf16>, vector<8x128xf32> -> vector<8x128xf32>
    %78 = arith.addf %72, %77 : vector<8x128xf32>
    %c13 = arith.constant 13 : index
    %c0_91 = arith.constant 0 : index
    %c0_92 = arith.constant 0 : index
    %79 = vector.load %arg3[%c13, %c0_91, %c0_92] : memref<16x8x8xbf16, #tpu.memory_space<vmem>>, vector<1x8x8xbf16>
    %80 = vector.shape_cast %79 : vector<1x8x8xbf16> to vector<8x8xbf16>
    %c0_93 = arith.constant 0 : index
    %c3_94 = arith.constant 3 : index
    %c0_95 = arith.constant 0 : index
    %c9_96 = arith.constant 9 : index
    %81 = vector.load %arg2[%c0_93, %c3_94, %c0_95, %c9_96] : memref<1x4x8x256xbf16, #tpu.memory_space<vmem>>, vector<1x1x8x128xbf16>
    %82 = vector.shape_cast %81 : vector<1x1x8x128xbf16> to vector<8x128xbf16>
    %cst_97 = arith.constant dense<0.000000e+00> : vector<8x128xf32>
    %83 = tpu.matmul %80, %82, %cst_97 {dimension_numbers = #tpu.dot_dimension_numbers<[1], [0], [0], [1], [0, 0, 1, 1], [], []>} : vector<8x8xbf16>, vector<8x128xbf16>, vector<8x128xf32> -> vector<8x128xf32>
    %84 = arith.addf %78, %83 : vector<8x128xf32>
    %c14 = arith.constant 14 : index
    %c0_98 = arith.constant 0 : index
    %c0_99 = arith.constant 0 : index
    %85 = vector.load %arg3[%c14, %c0_98, %c0_99] : memref<16x8x8xbf16, #tpu.memory_space<vmem>>, vector<1x8x8xbf16>
    %86 = vector.shape_cast %85 : vector<1x8x8xbf16> to vector<8x8xbf16>
    %c0_100 = arith.constant 0 : index
    %c2_101 = arith.constant 2 : index
    %c0_102 = arith.constant 0 : index
    %c10_103 = arith.constant 10 : index
    %87 = vector.load %arg2[%c0_100, %c2_101, %c0_102, %c10_103] : memref<1x4x8x256xbf16, #tpu.memory_space<vmem>>, vector<1x1x8x128xbf16>
    %88 = vector.shape_cast %87 : vector<1x1x8x128xbf16> to vector<8x128xbf16>
    %cst_104 = arith.constant dense<0.000000e+00> : vector<8x128xf32>
    %89 = tpu.matmul %86, %88, %cst_104 {dimension_numbers = #tpu.dot_dimension_numbers<[1], [0], [0], [1], [0, 0, 1, 1], [], []>} : vector<8x8xbf16>, vector<8x128xbf16>, vector<8x128xf32> -> vector<8x128xf32>
    %90 = arith.addf %84, %89 : vector<8x128xf32>
    %c15 = arith.constant 15 : index
    %c0_105 = arith.constant 0 : index
    %c0_106 = arith.constant 0 : index
    %91 = vector.load %arg3[%c15, %c0_105, %c0_106] : memref<16x8x8xbf16, #tpu.memory_space<vmem>>, vector<1x8x8xbf16>
    %92 = vector.shape_cast %91 : vector<1x8x8xbf16> to vector<8x8xbf16>
    %c0_107 = arith.constant 0 : index
    %c3_108 = arith.constant 3 : index
    %c0_109 = arith.constant 0 : index
    %c10_110 = arith.constant 10 : index
    %93 = vector.load %arg2[%c0_107, %c3_108, %c0_109, %c10_110] : memref<1x4x8x256xbf16, #tpu.memory_space<vmem>>, vector<1x1x8x128xbf16>
    %94 = vector.shape_cast %93 : vector<1x1x8x128xbf16> to vector<8x128xbf16>
    %cst_111 = arith.constant dense<0.000000e+00> : vector<8x128xf32>
    %95 = tpu.matmul %92, %94, %cst_111 {dimension_numbers = #tpu.dot_dimension_numbers<[1], [0], [0], [1], [0, 0, 1, 1], [], []>} : vector<8x8xbf16>, vector<8x128xbf16>, vector<8x128xf32> -> vector<8x128xf32>
    %96 = arith.addf %90, %95 : vector<8x128xf32>
    %c0_112 = arith.constant 0 : index
    %c0_113 = arith.constant 0 : index
    %97 = vector.load %arg4[%c0_112, %c0_113] : memref<1x128xf32, #tpu.memory_space<vmem>>, vector<1x128xf32>
    %98 = vector.broadcast %97 : vector<1x128xf32> to vector<8x128xf32>
    %99 = arith.mulf %96, %98 : vector<8x128xf32>
    %cst_114 = arith.constant dense<0.000000e+00> : vector<8xf32>
    %100 = vector.multi_reduction <add>, %99, %cst_114 [1] : vector<8x128xf32> to vector<8xf32>
    %101 = vector.shape_cast %100 : vector<8xf32> to vector<8x1xf32>
    %cst_115 = arith.constant 1.562500e-02 : f32
    %102 = vector.broadcast %cst_115 : f32 to vector<8x1xf32>
    %103 = arith.mulf %101, %102 : vector<8x1xf32>
    %104 = vector.broadcast %103 : vector<8x1xf32> to vector<8x128xf32>
    %105 = arith.subf %96, %104 : vector<8x128xf32>
    %106 = vector.broadcast %97 : vector<1x128xf32> to vector<8x128xf32>
    %107 = arith.mulf %105, %106 : vector<8x128xf32>
    %108 = arith.mulf %107, %107 : vector<8x128xf32>
    %cst_116 = arith.constant dense<0.000000e+00> : vector<8xf32>
    %109 = vector.multi_reduction <add>, %108, %cst_116 [1] : vector<8x128xf32> to vector<8xf32>
    %110 = vector.shape_cast %109 : vector<8xf32> to vector<8x1xf32>
    %cst_117 = arith.constant 1.562500e-02 : f32
    %111 = vector.broadcast %cst_117 : f32 to vector<8x1xf32>
    %112 = arith.mulf %110, %111 : vector<8x1xf32>
    %cst_118 = arith.constant 9.99999974E-6 : f32
    %113 = vector.broadcast %cst_118 : f32 to vector<8x1xf32>
    %114 = arith.addf %112, %113 : vector<8x1xf32>
    %115 = math.rsqrt %114 : vector<8x1xf32>
    %116 = vector.broadcast %115 : vector<8x1xf32> to vector<8x128xf32>
    %117 = arith.mulf %105, %116 : vector<8x128xf32>
    %cst_119 = arith.constant 0.000000e+00 : f32
    %118 = vector.broadcast %cst_119 : f32 to vector<8x128xf32>
    %119 = arith.cmpf oge, %117, %118 : vector<8x128xf32>
    %cst_120 = arith.constant 2.000000e-01 : f32
    %120 = vector.broadcast %cst_120 : f32 to vector<8x128xf32>
    %121 = arith.mulf %120, %117 : vector<8x128xf32>
    %122 = arith.select %119, %117, %121 : vector<8x128xi1>, vector<8x128xf32>
    %c0_121 = arith.constant 0 : index
    %c0_122 = arith.constant 0 : index
    %c0_123 = arith.constant 0 : index
    %123 = vector.load %arg5[%c0_121, %c0_122, %c0_123] : memref<1x8x128xf32, #tpu.memory_space<vmem>>, vector<1x8x128xf32>
    %124 = vector.shape_cast %123 : vector<1x8x128xf32> to vector<8x128xf32>
    %125 = vector.shape_cast %122 : vector<8x128xf32> to vector<1x8x128xf32>
    tpu.vector_store %arg5[%c0_121, %c0_122, %c0_123], %125 {strides = array<i32>} : memref<1x8x128xf32, #tpu.memory_space<vmem>>, vector<1x8x128xf32>,
    return
  }
  func.func @transform_0(%arg0: i32, %arg1: i32) -> (i32, i32, i32, i32) {
    %c0_i32 = arith.constant 0 : i32
    %c0_i32_0 = arith.constant 0 : i32
    %c0_i32_1 = arith.constant 0 : i32
    %c0_i32_2 = arith.constant 0 : i32
    return %arg0, %c0_i32, %c0_i32_0, %c0_i32_1 : i32, i32, i32, i32
  }
  func.func @transform_1(%arg0: i32, %arg1: i32) -> (i32, i32, i32) {
    %c0_i32 = arith.constant 0 : i32
    %c0_i32_0 = arith.constant 0 : i32
    %c0_i32_1 = arith.constant 0 : i32
    return %c0_i32, %arg1, %c0_i32_0 : i32, i32, i32
  }
  func.func @transform_2(%arg0: i32, %arg1: i32) -> (i32, i32) {
    %c0_i32 = arith.constant 0 : i32
    %c0_i32_0 = arith.constant 0 : i32
    %c0_i32_1 = arith.constant 0 : i32
    return %c0_i32, %c0_i32_0 : i32, i32
  }
  func.func @transform_3(%arg0: i32, %arg1: i32) -> (i32, i32, i32) {
    %c0_i32 = arith.constant 0 : i32
    %c0_i32_0 = arith.constant 0 : i32
    return %arg0, %arg1, %c0_i32 : i32, i32, i32
  }
}

</mosaic_0001>

<bundles_post_ra>
// kernel: tpu_custom_call.1
= control target key start
LH: loop header
LB: loop body
LE: loop exit
PB: predicated region body
PF: predicated region fallthrough
CT: control target
= control target key end

     0   :  { %8 = vsyncpa [#allocation3], 0  ;;  %s2163_s0 = inlined_call_operand.hbm [shape: bf16[2,4,8,256], index: 0, kind: input, shape index: {}]   ;;  %s2164_s1 = inlined_call_operand.hbm [shape: bf16[16,8,8], index: 1, kind: input, shape index: {}]   ;;  %s2165_s2 = inlined_call_operand.hbm [shape: f32[1,128], index: 2, kind: input, shape index: {}]   ;;  %s2166_s3 = inlined_call_operand.hbm [shape: f32[2,8,128], index: 3, kind: output, shape index: {}]  }
   0x1   :  { %10 = vsyncpa [#allocation3 + $0x1], 0 }
   0x2   :  { %11 = vsyncpa [#allocation6], 0 }
   0x3   :  { %12 = vsyncpa [#allocation4], 0 }
   0x4   :  { %14 = vsyncpa [#allocation4 + $0x1], 0  ;;  %s1798_s12 = smov 0   ;;  %s1800_s13 = smov 0  }
   0x5   :  { %s1802_s14 = smov 0   ;;  %s1804_s15 = smov 0  }
   0x6   :  { %s1806_s16 = smov 0   ;;  %s1808_s17 = smov 0  }
   0x7 LB: > { %s1254_s18 = sadd.s32 4294967295, %s1763_s17   ;;  %s1255_s19 = sadd.s32 4294967294, %s1763_s17   ;;  %s1763_s17 = sphi %s1808_s17, %s20_s17   ;;  %s1759_s16 = sphi %s1806_s16, %s2188_s16   ;;  %s1755_s15 = sphi %s1804_s15, %s2187_s15   ;;  %s1751_s14 = sphi %s1802_s14, %s2186_s14   ;;  %s1747_s13 = sphi %s1800_s13, %s2185_s13   ;;  %s1743_s12 = sphi %s1798_s12, %s2184_s12  }
   0x8   : > { %p52_p0 = scmp.ne.s32.totalorder %s1747_s13, %s1743_s12  ;;  %p1832_p1 = scmp.eq.s32.totalorder %s1254_s18, 0 }
   0x9   : > { %p1836_p2 = scmp.eq.s32.totalorder %s1254_s18, 1  ;;  %p131_p3 = scmp.eq.s32.totalorder %s1255_s19, 1 }
   0xa   : > { %s2171_s20 = scalar_select %p1832_p1, 1, 0 }
   0xb   : > { %p1842_p4 = por %p1832_p1, %p52_p0  ;;  %p1256_p5 = scmp.ge.s32.totalorder %s1763_s17, 1 }
   0xc   : > { %p1847_p6 = por %p131_p3, %p52_p0  ;;  %p138_p7 = scmp.lt.s32.totalorder %s1763_s17, 3 }
   0xd   : > { %s2173_s22 = scalar_select %p1842_p4, 1, 0 }
   0xe   : > { %s2174_s23 = scalar_select %p1847_p6, 1, 0 }
   0xf   : > { %p1852_p8 = pnand %p1256_p5, %p138_p7  ;;  %s1765_s25 = smov [#allocation5]  }
  0x10   : > { %s152_s26 = sshll.u32 %s1765_s25, 4  ;;  %s1766_s28 = smov [#allocation7]   ;;  %s1856_s26 = int_to_ptr.vmem [resolvable:$true] %s152_s26 }
  0x11   : > { %p1501_p9 = pneg %p1852_p8  ;;  %s166_s29 = sshll.u32 %s1766_s28, 4  ;;  %s1867_s29 = int_to_ptr.vmem [resolvable:$true] %s166_s29 }
  0x12   : > { %s1591_s5 = scalar_lea.hbm %s2164_s1, 1024 }
  0x13   : > { %p1863_p11 = pnand %p1501_p9, %p1832_p1  ;;  %p1592_p12 = scmp.ne.s32.totalorder %s2164_s1, %s1591_s5 }
  0x14   : > { %p1598_p5 = scmp.lt.u32.totalorder %s1591_s5, %s2164_s1 }
  0x15   : > { %p1593_p13 = pneg %p1863_p11 }
  0x17   : > { %p1594_p0 = pnand %p1593_p13, %p1592_p12 }
  0x19   : > { %p1595_p3 = pneg %p1594_p0 }
  0x1b   : > { %p1600_p7 = pnand %p1598_p5, %p1595_p3 }
  0x1d   : > { %1603 = shalt.err (!%p1600_p7)
}
  0x1e   : > { %s1604_s10 = scalar_lea.vmem %s1856_s26, 1024  ;;  %p1612_p1 = scmp.lt.s32.totalorder %s1856_s26, %s1856_s26 }
  0x1f   : > { %p1605_p9 = scmp.ne.s32.totalorder %s1856_s26, %s1604_s10  ;;  %p1613_p12 = scmp.lt.s32.totalorder %s1604_s10, %s1604_s10 }
  0x21   : > { %p1607_p10 = pnand %p1605_p9, %p1593_p13  ;;  %p1614_p0 = por %p1613_p12, %p1612_p1 }
  0x23   : > { %p1608_p6 = pneg %p1607_p10 }
  0x25   : > { %p1615_p4 = pnand %p1614_p0, %p1608_p6 }
  0x27   : > { %1618 = shalt.err (!%p1615_p4)
}
  0x28   : > { %s1767_s11 = smov 64   ;;  %s1768_s18 = smov 4  }
  0x29   : > { %1504 = dma.hbm_to_vmem [thread:$0]  (!%p1863_p11), %s2164_s1, 1024, %s1856_s26, [#allocation6], %s1767_s11, %s1767_s11, %s1768_s18  }
  0x2a   : > { %s1619_s4 = scalar_lea.hbm %s2165_s2, 16 }
  0x2b   : > { %p1620_p1 = scmp.ne.s32.totalorder %s2165_s2, %s1619_s4  ;;  %p1626_p10 = scmp.lt.u32.totalorder %s1619_s4, %s2165_s2 }
  0x2d   : > { %p1622_p4 = pnand %p1620_p1, %p1593_p13 }
  0x2f   : > { %p1623_p6 = pneg %p1622_p4 }
  0x31   : > { %p1628_p3 = pnand %p1626_p10, %p1623_p6 }
  0x33   : > { %1631 = shalt.err (!%p1628_p3)
}
  0x34   : > { %s1632_s26 = scalar_lea.vmem %s1867_s29, 16  ;;  %s1639_s9 = scalar_lea.vmem %s1867_s29, 32 }
  0x35   : > { %p1633_p5 = scmp.ne.s32.totalorder %s1867_s29, %s1632_s26  ;;  %p1640_p12 = scmp.lt.s32.totalorder %s1867_s29, %s1867_s29 }
  0x36   : > { %p1641_p0 = scmp.lt.s32.totalorder %s1639_s9, %s1632_s26 }
  0x37   : > { %p1635_p7 = pnand %p1633_p5, %p1593_p13 }
  0x38   : > { %p1642_p1 = por %p1641_p0, %p1640_p12 }
  0x39   : > { %p1636_p9 = pneg %p1635_p7 }
  0x3b   : > { %p1643_p4 = pnand %p1642_p1, %p1636_p9 }
  0x3d   : > { %1646 = shalt.err (!%p1643_p4)
}
  0x3e   : > { %1507 = dma.hbm_to_vmem [thread:$0]  (!%p1863_p11), %s2165_s2, 16, %s1867_s29, [#allocation6]  }
  0x3f   : > { %s32_s18 = sadd.s32 1, %s1759_s16  ;;  %s39_s19 = sadd.s32 1, %s1751_s14 }
  0x40   : > { %p34_p13 = scmp.ge.s32.totalorder %s32_s18, 2  ;;  %p46_p6 = scmp.ne.s32.totalorder %s1751_s14, %s1747_s13 }
  0x41   : > { %p47_p10 = scmp.eq.s32.totalorder %s1763_s17, 0  ;;  %p1518_p3 = scmp.lt.s32.totalorder %s1763_s17, 2 }
  0x42   : > { %s2190_s18 = smov (%p34_p13, %s32_s18), 0  ;;  %p1932_p7 = por %p1836_p2, %p46_p6 }
  0x43   : > { %p48_p5 = por %p47_p10, %p46_p6  ;;  %s36_s25 = ssub.s32 %s1759_s16, %s2190_s18 }
  0x44   : > { %s2177_s27 = scalar_select %p1932_p7, 1, 0 }
  0x45   : > { %s177_s28 = sand.u32 1, %s1751_s14   ;;  %p37_p9 = scmp.eq.s32.totalorder %s36_s25, 0 }
  0x46   : > { %s1260_s29 = sshll.u32 %s177_s28, 5  ;;  %s1303_s30 = sshll.u32 %s1759_s16, 9 }
  0x47   : > { %s1941_s4 = scalar_select %p37_p9, %s1751_s14, %s39_s19  }
  0x48   : > { %s1946_s7 = scalar_lea.hbm %s2163_s0, %s1303_s30  ;;  %s181_s21 = scalar_lea.vmem [#allocation2], %s1260_s29 }
  0x49   : > { %s188_s8 = sshll.u32 %s181_s21, 4  ;;  %p1950_p2 = pnand %p1518_p3, %p48_p5  ;;  %s1954_s8 = int_to_ptr.vmem [resolvable:$true] %s188_s8 }
  0x4a   : > { %s1956_s9 = scalar_lea.sflag [#allocation3], %s177_s28  ;;  %s1647_s10 = scalar_lea.hbm %s1946_s7, 512 }
  0x4b   : > { %p1648_p11 = scmp.ne.s32.totalorder %s1946_s7, %s1647_s10  ;;  %p1649_p12 = pneg %p1950_p2 }
  0x4c   : > { %s1652_s25 = scalar_lea.hbm %s2163_s0, 1024  ;;  %p1653_p4 = scmp.lt.u32.totalorder %s1946_s7, %s2163_s0 }
  0x4d   : > { %p1650_p0 = pnand %p1649_p12, %p1648_p11  ;;  %p1654_p13 = scmp.lt.u32.totalorder %s1652_s25, %s1647_s10 }
  0x4e   : > { %p1656_p10 = scmp.lt.u32.totalorder %s1647_s10, %s1946_s7 }
  0x4f   : > { %p1651_p1 = pneg %p1650_p0  ;;  %p1655_p6 = por %p1654_p13, %p1653_p4 }
  0x51   : > { %p1657_p3 = por %p1656_p10, %p1655_p6 }
  0x53   : > { %p1658_p5 = pnand %p1657_p3, %p1651_p1 }
  0x55   : > { %1661 = shalt.err (!%p1658_p5)
}
  0x56   : > { %s1662_s28 = scalar_lea.vmem %s1954_s8, 512  ;;  %s1769_s5 = smov [#allocation2]  }
  0x57   : > { %p1663_p9 = scmp.ne.s32.totalorder %s1954_s8, %s1662_s28  ;;  %s1667_s6 = sshll.u32 %s1769_s5, 4  ;;  %s1668_s6 = int_to_ptr.vmem [resolvable:$false] %s1667_s6 }
  0x58   : > { %s1669_s21 = scalar_lea.vmem %s1668_s6, 1024  ;;  %p1670_p7 = scmp.lt.s32.totalorder %s1954_s8, %s1668_s6 }
  0x59   : > { %p1665_p11 = pnand %p1663_p9, %p1649_p12  ;;  %p1671_p4 = scmp.lt.s32.totalorder %s1669_s21, %s1662_s28 }
  0x5b   : > { %p1666_p0 = pneg %p1665_p11  ;;  %p1672_p13 = por %p1671_p4, %p1670_p7 }
  0x5d   : > { %p1673_p6 = pnand %p1672_p13, %p1666_p0 }
  0x5f   : > { %1676 = shalt.err (!%p1673_p6)
}
  0x60   : > { %s1770_s10 = smov 128   ;;  %s1771_s11 = smov 8  }
  0x61   : > { %1511 = dma.hbm_to_vmem [thread:$0]  (!%p1950_p2), %s1946_s7, 512, %s1954_s8, %s1956_s9, %s1770_s10, %s1770_s10, %s1771_s11  }
  0x62   : > { %200 = sbr.rel (%p1852_p8) target bundleno = 862 (0x35e), region = 32  ;;  %s1987_s19 = sand.u32 (!%p1852_p8), 1, %s1747_s13  }
  0x63   : > { %s1264_s25 = sshll.u32 (!%p1852_p8), %s1987_s19, 5  ;;  %s203_s29 = scalar_lea.sflag (!%p1852_p8), [#allocation3], %s1987_s19 }
  0x64   : > { %s1991_s30 = scalar_lea.vmem (!%p1852_p8), [#allocation2], %s1264_s25  ;;  %p2179_p7 = scmp.ne.s32.totalorder (!%p1852_p8), %s2173_s22, 0 }
  0x69   : > { %1730 = dma.done.wait (%p2179_p7), %s203_s29, 512  }
  0x6a   : > { %1732 = vsyncadd (%p2179_p7), %s203_s29, 4294966784  ;;  %p2180_p2 = scmp.ne.s32.totalorder %s2171_s20, 0 }
  0x6c   : > { %1734 = dma.done.wait (%p2180_p2), [#allocation6], 1040  }
  0x6d   : > { %1736 = vsyncadd (%p2180_p2), [#allocation6], 4294966256  ;;  %v1772_v0 = vmov 0.0   ;;  %vm1773_vm0 = vmmov 0   ;;  %v1274_v1 = vld [vmem:[%s1991_s30 + $0x8] sm:$0xff]  ;;  %v340_v2 = vld [vmem:[%s1991_s30] sm:$0xff] }
  0x6e   : > { %1336 = vmatprep.subr.bf16.mxu1 %v1772_v0  ;;  %1384 = vmatprep.subr.bf16.mxu0 %v1772_v0  ;;  %vm248_vm1 = vcmask 1043456   ;;  %v1275_v3 = vcombine.low %v1274_v1, %v1274_v1  ;;  %v1271_v4 = vcombine.low %v340_v2, %v340_v2  ;;  %v1268_v5 = vld [vmem:[%s1991_s30 + $0x8] sm:$0xf]  ;;  %s1774_s20 = smov 119   ;;  %v1276_v6 = vcombine.high %v1274_v1, %v1274_v1  ;;  %v239_v9 = vld [vmem:[%s1991_s30] sm:$0xf] }
  0x6f   : > { %1338 = vmatprep.mubr.msk.bf16.mxu1 %vm1773_vm0, %v1772_v0  ;;  %1386 = vmatprep.mubr.msk.bf16.mxu0 %vm1773_vm0, %v1772_v0  ;;  %v1272_v7 = vcombine.high %v340_v2, %v340_v2  ;;  %v250_v8 = vsel %vm248_vm1, %v1268_v5, 0  ;;  %v241_v10 = vld [vmem:[#allocation5 + $0x4] sm:$0xf]  ;;  %vm244_vm2 = vcmask 64512   ;;  %v296_v11 = vsel %vm248_vm1, %v239_v9, 0  ;;  %s1775_s22 = smov 127  }
  0x70   : > { %738 = vrot.lane.b32.xlu1 %v1275_v3, %s1774_s20  ;;  %683 = vrot.lane.b32.xlu0 %v1271_v4, %s1774_s20  ;;  %s1776_s24 = smov 118   ;;  %v238_v12 = vld [vmem:[#allocation5] sm:$0xf]  ;;  %v1282_v13 = vld [vmem:[%s1991_s30 + $0x10] sm:$0xff]  ;;  %v1286_v16 = vld [vmem:[%s1991_s30 + $0x18] sm:$0xff]  ;;  %vm687_vm3 = vcmask 973824  }
  0x71   : > { %1337 = vmatpush3.bf16.msra.mxu1 %v250_v8  ;;  %v1284_v14 = vcombine.high %v1282_v13, %v1282_v13  ;;  %v1283_v15 = vcombine.low %v1282_v13, %v1282_v13  ;;  %v1288_v17 = vcombine.high %v1286_v16, %v1286_v16  ;;  %v1287_v18 = vcombine.low %v1286_v16, %v1286_v16  ;;  %v682_v26 = vld [vmem:[#allocation5 + $0x20] sm:$0xf]  ;;  %v339_v32 = vld [vmem:[#allocation5 + $0x8] sm:$0xf]  ;;  %v737_v40 = vld [vmem:[#allocation5 + $0x24] sm:$0xf] }
  0x72   : > { %1342 = vmatprep.subr.bf16.mxu1 %v1772_v0  ;;  %vm350_vm4 = vcmask 1039360   ;;  %vm796_vm5 = vcmask 965632   ;;  %v1278_v42 = vld [vmem:[%s1991_s30 + $0x10] sm:$0xf]  ;;  %v400_v43 = vld [vmem:[#allocation5 + $0xc] sm:$0xf] }
  0x73   : > { %v467_v44 = vsel %vm248_vm1, %v1278_v42, 0  ;;  %v791_v50 = vld [vmem:[#allocation5 + $0x28] sm:$0xf]  ;;  %v1280_v52 = vld [vmem:[%s1991_s30 + $0x18] sm:$0xf]  ;;  %s1267_s7 = sshll.u32 %s1987_s19, 3 }
  0x74   : > { %740 = vrot.lane.b32.xlu1 %v1276_v6, %s1774_s20  ;;  %685 = vrot.lane.b32.xlu0 %v1272_v7, %s1774_s20  ;;  %v460_v53 = vld [vmem:[#allocation5 + $0x10] sm:$0xf]  ;;  %v518_v54 = vsel %vm248_vm1, %v1280_v52, 0  ;;  %v846_v60 = vld [vmem:[#allocation5 + $0x2c] sm:$0xf]  ;;  %s1300_s8 = sshll.u32 %s1755_s15, 7 }
  0x75   : > { %1339 = vmatmul.mubr.msk.bf16.vlgmr.msra.gmra.mrb[0].mxu1 %vm244_vm2, %v241_v10  ;;  %v511_v63 = vld [vmem:[#allocation5 + $0x14] sm:$0xf]  ;;  %v562_v10 = vld [vmem:[#allocation5 + $0x18] sm:$0xf]  ;;  %s236_s26 = scalar_lea.vmem [#allocation8], %s1267_s7  ;;  %s2114_s6 = scalar_lea.hbm %s2166_s3, %s1300_s8 }
  0x76   : > { %1343 = vmatpush3.bf16.msra.mxu1 %v296_v11  ;;  %1344 = vmatprep.mubr.msk.bf16.mxu1 %vm1773_vm0, %v1772_v0  ;;  %v954_v13 = vld [vmem:[#allocation5 + $0x34] sm:$0xf]  ;;  %s1154_s9 = sshll.u32 %s236_s26, 4  ;;  %s1140_s21 = scalar_lea.sflag [#allocation4], %s1987_s19  ;;  %s2116_s9 = int_to_ptr.vmem [resolvable:$true] %s1154_s9 }
  0x77   : > { %1348 = vmatprep.subr.bf16.mxu1 %v1772_v0  ;;  %s1677_s10 = scalar_lea.vmem %s2116_s9, 128  ;;  %p2181_p12 = scmp.ne.s32.totalorder %s2177_s27, 0 }
  0x78   : > { %348 = vrot.lane.b32.xlu1 %v1272_v7, %s1775_s22  ;;  %346 = vrot.lane.b32.xlu0 %v1271_v4, %s1775_s22  ;;  %p1678_p8 = scmp.ne.s32.totalorder %s2116_s9, %s1677_s10  ;;  %s1777_s15 = smov [#allocation8]  }
  0x79   : > { %s1681_s11 = sshll.u32 %s1777_s15, 4  ;;  %s1682_s11 = int_to_ptr.vmem [resolvable:$false] %s1681_s11 }
  0x7a   : > { %p1679_p1 = pnand %p1678_p8, %p2181_p12  ;;  %s1683_s25 = scalar_lea.vmem %s1682_s11, 256 }
  0x7b   : > { %p1684_p3 = scmp.lt.s32.totalorder %s2116_s9, %s1682_s11  ;;  %p1685_p5 = scmp.lt.s32.totalorder %s1683_s25, %s1677_s10 }
  0x7c   : > { %794 = vrot.lane.b32.xlu1 %v1272_v7, %s1776_s24  ;;  %792 = vrot.lane.b32.xlu0 %v1271_v4, %s1776_s24  ;;  %v900_v7 = vld [vmem:[#allocation5 + $0x30] sm:$0xf]  ;;  %p1680_p10 = pneg %p1679_p1 }
  0x7d   : > { %p1686_p9 = por %p1685_p5, %p1684_p3 }
  0x7f   : > { %p1687_p11 = pnand %p1686_p9, %p1680_p10 }
  0x80   : > { %409 = vrot.lane.b32.xlu1 %v1276_v6, %s1775_s22  ;;  %407 = vrot.lane.b32.xlu0 %v1275_v3, %s1775_s22 }
  0x81   : > { %1345 = vmatmul.mubr.msk.bf16.vlgmr.msra.gmra.mrb[0].mxu1 %vm244_vm2, %v238_v12 }
  0x82   : > { %1350 = vmatprep.mubr.msk.bf16.mxu1 %vm1773_vm0, %v1772_v0 }
  0x84   : > { %849 = vrot.lane.b32.xlu1 %v1276_v6, %s1776_s24  ;;  %847 = vrot.lane.b32.xlu0 %v1275_v3, %s1776_s24 }
  0x88   : > { %903 = vrot.lane.b32.xlu1 %v1284_v14, %s1774_s20  ;;  %901 = vrot.lane.b32.xlu0 %v1283_v15, %s1774_s20 }
  0x8c   : > { %957 = vrot.lane.b32.xlu1 %v1288_v17, %s1774_s20  ;;  %955 = vrot.lane.b32.xlu0 %v1287_v18, %s1774_s20 }
  0x90   : > { %571 = vrot.lane.b32.xlu1 %v1284_v14, %s1775_s22  ;;  %569 = vrot.lane.b32.xlu0 %v1283_v15, %s1775_s22 }
  0x94   : > { %1011 = vrot.lane.b32.xlu1 %v1284_v14, %s1776_s24  ;;  %1009 = vrot.lane.b32.xlu0 %v1283_v15, %s1776_s24  ;;  %v622_v15 = vld [vmem:[#allocation5 + $0x1c] sm:$0xf] }
  0x98   : > { %631 = vrot.lane.b32.xlu1 %v1288_v17, %s1775_s22  ;;  %629 = vrot.lane.b32.xlu0 %v1287_v18, %s1775_s22 }
  0x9c   : > { %1065 = vrot.lane.b32.xlu1 %v1288_v17, %s1776_s24  ;;  %1063 = vrot.lane.b32.xlu0 %v1287_v18, %s1776_s24 }
  0xe2   : > { %v739_v19 = vpop.permute.xlu1 %738  ;;  %v684_v20 = vpop.permute.xlu0 %683 }
  0xe6   : > { %v741_v21 = vpop.permute.xlu1 %740  ;;  %v686_v22 = vpop.permute.xlu0 %685 }
  0xe7   : > { %v742_v23 = vsel %vm687_vm3, %v739_v19, %v741_v21  ;;  %v688_v24 = vsel %vm687_vm3, %v684_v20, %v686_v22  ;;  %v1008_v19 = vld [vmem:[#allocation5 + $0x38] sm:$0xf]  ;;  %v1062_v21 = vld [vmem:[#allocation5 + $0x3c] sm:$0xf] }
  0xe8   : > { %v693_v25 = vsel %vm248_vm1, %v688_v24, 0  ;;  %v747_v27 = vsel %vm248_vm1, %v742_v23, 0 }
  0xe9   : > { %1385 = vmatpush3.bf16.msra.mxu0 %v693_v25 }
  0xea   : > { %v349_v28 = vpop.permute.xlu1 %348  ;;  %v347_v29 = vpop.permute.xlu0 %346  ;;  %1390 = vmatprep.subr.bf16.mxu0 %v1772_v0 }
  0xeb   : > { %v351_v30 = vsel %vm350_vm4, %v347_v29, %v349_v28 }
  0xec   : > { %v356_v31 = vsel %vm248_vm1, %v351_v30, 0  ;;  %1387 = vmatmul.mubr.msk.bf16.vlgmr.msra.gmra.mrb[0].mxu0 %vm244_vm2, %v682_v26 }
  0xed   : > { %1349 = vmatpush3.bf16.msra.mxu1 %v356_v31  ;;  %1391 = vmatpush3.bf16.msra.mxu0 %v747_v27  ;;  %v1298_v27 = vld [vmem:[#allocation7] ss:$0 sm:$0xff] }
  0xee   : > { %v795_v33 = vpop.permute.xlu1 %794  ;;  %v793_v34 = vpop.permute.xlu0 %792  ;;  %1392 = vmatprep.mubr.msk.bf16.mxu0 %vm1773_vm0, %v1772_v0  ;;  %1354 = vmatprep.subr.bf16.mxu1 %v1772_v0 }
  0xef   : > { %1396 = vmatprep.subr.bf16.mxu0 %v1772_v0  ;;  %v797_v37 = vsel %vm796_vm5, %v793_v34, %v795_v33 }
  0xf0   : > { %1351 = vmatmul.mubr.msk.bf16.vlgmr.msra.gmra.mrb[0].mxu1 %vm244_vm2, %v339_v32  ;;  %v802_v41 = vsel %vm248_vm1, %v797_v37, 0 }
  0xf1   : > { %1356 = vmatprep.mubr.msk.bf16.mxu1 %vm1773_vm0, %v1772_v0 }
  0xf2   : > { %v410_v35 = vpop.permute.xlu1 %409  ;;  %v408_v36 = vpop.permute.xlu0 %407 }
  0xf3   : > { %v411_v38 = vsel %vm350_vm4, %v408_v36, %v410_v35 }
  0xf4   : > { %v416_v39 = vsel %vm248_vm1, %v411_v38, 0 }
  0xf5   : > { %1355 = vmatpush3.bf16.msra.mxu1 %v416_v39 }
  0xf6   : > { %1360 = vmatprep.subr.bf16.mxu1 %v1772_v0  ;;  %v850_v45 = vpop.permute.xlu1 %849  ;;  %v848_v46 = vpop.permute.xlu0 %847 }
  0xf7   : > { %v851_v47 = vsel %vm796_vm5, %v848_v46, %v850_v45 }
  0xf8   : > { %1393 = vmatmul.mubr.msk.bf16.vlgmr.msra.gmra.mrb[0].mxu0 %vm244_vm2, %v737_v40  ;;  %v856_v51 = vsel %vm248_vm1, %v851_v47, 0 }
  0xf9   : > { %1397 = vmatpush3.bf16.msra.mxu0 %v802_v41  ;;  %1398 = vmatprep.mubr.msk.bf16.mxu0 %vm1773_vm0, %v1772_v0 }
  0xfa   : > { %1402 = vmatprep.subr.bf16.mxu0 %v1772_v0  ;;  %v904_v48 = vpop.permute.xlu1 %903  ;;  %v902_v49 = vpop.permute.xlu0 %901 }
  0xfb   : > { %v905_v57 = vsel %vm687_vm3, %v902_v49, %v904_v48 }
  0xfc   : > { %1357 = vmatmul.mubr.msk.bf16.vlgmr.msra.gmra.mrb[0].mxu1 %vm244_vm2, %v400_v43  ;;  %v910_v61 = vsel %vm248_vm1, %v905_v57, 0 }
  0xfd   : > { %1361 = vmatpush3.bf16.msra.mxu1 %v467_v44  ;;  %1362 = vmatprep.mubr.msk.bf16.mxu1 %vm1773_vm0, %v1772_v0 }
  0xfe   : > { %1366 = vmatprep.subr.bf16.mxu1 %v1772_v0  ;;  %v958_v55 = vpop.permute.xlu1 %957  ;;  %v956_v56 = vpop.permute.xlu0 %955 }
  0xff   : > { %v959_v4 = vsel %vm687_vm3, %v956_v56, %v958_v55 }
 0x100   : > { %v964_v8 = vsel %vm248_vm1, %v959_v4, 0 }
 0x102   : > { %v572_v58 = vpop.permute.xlu1 %571  ;;  %v570_v59 = vpop.permute.xlu0 %569 }
 0x103   : > { %v573_v62 = vsel %vm350_vm4, %v570_v59, %v572_v58 }
 0x104   : > { %1399 = vmatmul.mubr.msk.bf16.vlgmr.msra.gmra.mrb[0].mxu0 %vm244_vm2, %v791_v50  ;;  %v578_v1 = vsel %vm248_vm1, %v573_v62, 0 }
 0x105   : > { %1403 = vmatpush3.bf16.msra.mxu0 %v856_v51  ;;  %1404 = vmatprep.mubr.msk.bf16.mxu0 %vm1773_vm0, %v1772_v0 }
 0x106   : > { %1408 = vmatprep.subr.bf16.mxu0 %v1772_v0  ;;  %v1012_v2 = vpop.permute.xlu1 %1011  ;;  %v1010_v3 = vpop.permute.xlu0 %1009 }
 0x107   : > { %v1013_v12 = vsel %vm796_vm5, %v1010_v3, %v1012_v2 }
 0x108   : > { %1363 = vmatmul.mubr.msk.bf16.vlgmr.msra.gmra.mrb[0].mxu1 %vm244_vm2, %v460_v53  ;;  %v1018_v14 = vsel %vm248_vm1, %v1013_v12, 0 }
 0x109   : > { %1367 = vmatpush3.bf16.msra.mxu1 %v518_v54  ;;  %1368 = vmatprep.mubr.msk.bf16.mxu1 %vm1773_vm0, %v1772_v0 }
 0x10a   : > { %1372 = vmatprep.subr.bf16.mxu1 %v1772_v0  ;;  %v632_v5 = vpop.permute.xlu1 %631  ;;  %v630_v6 = vpop.permute.xlu0 %629 }
 0x10b   : > { %v633_v9 = vsel %vm350_vm4, %v630_v6, %v632_v5 }
 0x10c   : > { %v638_v11 = vsel %vm248_vm1, %v633_v9, 0 }
 0x10e   : > { %v1066_v16 = vpop.permute.xlu1 %1065  ;;  %v1064_v17 = vpop.permute.xlu0 %1063 }
 0x10f   : > { %v1067_v18 = vsel %vm796_vm5, %v1064_v17, %v1066_v16 }
 0x110   : > { %1405 = vmatmul.mubr.msk.bf16.vlgmr.msra.gmra.mrb[0].mxu0 %vm244_vm2, %v846_v60  ;;  %v1072_v20 = vsel %vm248_vm1, %v1067_v18, 0 }
 0x111   : > { %1409 = vmatpush3.bf16.msra.mxu0 %v910_v61  ;;  %1410 = vmatprep.mubr.msk.bf16.mxu0 %vm1773_vm0, %v1772_v0 }
 0x112   : > { %1414 = vmatprep.subr.bf16.mxu0 %v1772_v0 }
 0x114   : > { %1369 = vmatmul.mubr.msk.bf16.vlgmr.msra.gmra.mrb[0].mxu1 %vm244_vm2, %v511_v63 }
 0x115   : > { %1373 = vmatpush3.bf16.msra.mxu1 %v578_v1  ;;  %1374 = vmatprep.mubr.msk.bf16.mxu1 %vm1773_vm0, %v1772_v0 }
 0x116   : > { %1378 = vmatprep.subr.bf16.mxu1 %v1772_v0 }
 0x11c   : > { %1411 = vmatmul.mubr.msk.bf16.vlgmr.msra.gmra.mrb[0].mxu0 %vm244_vm2, %v900_v7 }
 0x11d   : > { %1415 = vmatpush3.bf16.msra.mxu0 %v964_v8  ;;  %1416 = vmatprep.mubr.msk.bf16.mxu0 %vm1773_vm0, %v1772_v0 }
 0x11e   : > { %1420 = vmatprep.subr.bf16.mxu0 %v1772_v0 }
 0x120   : > { %1375 = vmatmul.mubr.msk.bf16.vlgmr.msra.gmra.mrb[0].mxu1 %vm244_vm2, %v562_v10 }
 0x121   : > { %1379 = vmatpush3.bf16.msra.mxu1 %v638_v11  ;;  %1380 = vmatprep.mubr.msk.bf16.mxu1 %vm1773_vm0, %v1772_v0 }
 0x128   : > { %1417 = vmatmul.mubr.msk.bf16.vlgmr.msra.gmra.mrb[0].mxu0 %vm244_vm2, %v954_v13 }
 0x129   : > { %1421 = vmatpush3.bf16.msra.mxu0 %v1018_v14  ;;  %1422 = vmatprep.mubr.msk.bf16.mxu0 %vm1773_vm0, %v1772_v0 }
 0x12a   : > { %1426 = vmatprep.subr.bf16.mxu0 %v1772_v0 }
 0x12c   : > { %1381 = vmatmul.mubr.msk.bf16.vlgmr.msra.gmra.mrb[0].mxu1 %vm244_vm2, %v622_v15 }
 0x134   : > { %1423 = vmatmul.mubr.msk.bf16.vlgmr.msra.gmra.mrb[0].mxu0 %vm244_vm2, %v1008_v19 }
 0x135   : > { %1427 = vmatpush3.bf16.msra.mxu0 %v1072_v20  ;;  %1428 = vmatprep.mubr.msk.bf16.mxu0 %vm1773_vm0, %v1772_v0 }
 0x140   : > { %1429 = vmatmul.mubr.msk.bf16.vlgmr.msra.gmra.mrb[0].mxu0 %vm244_vm2, %v1062_v21 }
 0x1ff   : > { %v674_v22 = vpop.f32.mrb[0].mxu1 }
 0x200   : > { %v1382_v23 = vpop.f32.mrb[1].mxu1 }
 0x201   : > { %v677_v24 = vpop.f32.mrb[2].mxu1 }
 0x202   : > { %v1383_v25 = vpop.f32.mrb[3].mxu1 }
 0x213   : > { %v1108_v26 = vpop.f32.mrb[0].mxu0 }
 0x214   : > { %v1432_v28 = vadd.f32 %v1108_v26, %v674_v22  ;;  %v1430_v29 = vpop.f32.mrb[1].mxu0 }
 0x215   : > { %v1111_v30 = vpop.f32.mrb[2].mxu0 }
 0x216   : > { %v1431_v31 = vpop.f32.mrb[3].mxu0  ;;  %v1122_v32 = vmul.f32 %v1432_v28, %v1298_v27 }
 0x218   : > { %1123 = vadd.xlane.f32.xlu0 %v1122_v32 }
 0x2a5   : > { %v1124_v33 = vpop.xlane.xlu0 %1123 }
 0x2a6   : > { %v1125_v34 = vmul.f32 0.015625, %v1124_v33 }
 0x2a8   : > { %v1126_v0 = vsub.f32 %v1432_v28, %v1125_v34 }
 0x2aa   : > { %v1127_v35 = vmul.f32 %v1298_v27, %v1126_v0 }
 0x2ac   : > { %v1128_v36 = vmul.f32 %v1127_v35, %v1127_v35 }
 0x2ae   : > { %1129 = vadd.xlane.f32.xlu1 %v1128_v36 }
 0x33b   : > { %v1130_v37 = vpop.xlane.xlu1 %1129 }
 0x33c   : > { %v1131_v38 = vmul.f32 0.015625, %v1130_v37 }
 0x33e   : > { %v1132_v39 = vadd.f32 1e-05, %v1131_v38 }
 0x340   : > { %1589 = vrsqrt.f32 %v1132_v39 }
 0x34a   : > { %v1590_v40 = vpop.eup %1589 }
 0x34b   : > { %v1134_v41 = vmul.f32 %v1590_v40, %v1126_v0 }
 0x34d   : > { %vm1135_vm6 = vcmp.ge.f32.partialorder %v1134_v41, 0.0  ;;  %v1136_v42 = vmul.f32 0.2, %v1134_v41 }
 0x34f   : > { %v1137_v43 = vsel %vm1135_vm6, %v1134_v41, %v1136_v42 }
 0x350   : > { %1138 = vst [vmem:[%s236_s26] sm:$0xff] %v1137_v43 }
 0x351   : > { %1690 = shalt.err (!%p1687_p11)
}
 0x352   : > { %s1691_s19 = scalar_lea.hbm %s2114_s6, 128  ;;  %s1695_s20 = scalar_lea.hbm %s2166_s3, 256 }
 0x353   : > { %p1692_p0 = scmp.ne.s32.totalorder %s2114_s6, %s1691_s19  ;;  %p1696_p6 = scmp.lt.u32.totalorder %s2114_s6, %s2166_s3 }
 0x354   : > { %p1697_p7 = scmp.lt.u32.totalorder %s1695_s20, %s1691_s19  ;;  %p1699_p8 = scmp.lt.u32.totalorder %s1691_s19, %s2114_s6 }
 0x355   : > { %p1693_p4 = pnand %p1692_p0, %p2181_p12 }
 0x356   : > { %p1698_p2 = por %p1697_p7, %p1696_p6 }
 0x357   : > { %p1694_p13 = pneg %p1693_p4 }
 0x358   : > { %p1700_p1 = por %p1699_p8, %p1698_p2 }
 0x35a   : > { %p1701_p10 = pnand %p1700_p1, %p1694_p13 }
 0x35c   : > { %1704 = shalt.err (!%p1701_p10)
}
 0x35d   : > { %1499 = dma.vmem_to_hbm [thread:$0]  (%p2181_p12), %s2116_s9, 128, %s2114_s6, %s1140_s21  }
 0x35e PF: > { %s1166_s7 = sand.u32 1, %s1743_s12   ;;  %p2182_p3 = scmp.ne.s32.totalorder %s2174_s23, 0 }
 0x35f   : > { %p2183_p5 = scmp.ge.s32.totalorder %s1763_s17, 2  ;;  %s1167_s8 = scalar_lea.sflag [#allocation4], %s1166_s7 }
 0x361   : > { %p1513_p9 = pnand %p2183_p5, %p2182_p3 }
 0x363   : > { %1738 = dma.done.wait (!%p1513_p9), %s1167_s8, 128  }
 0x364   : > { %1740 = vsyncadd (!%p1513_p9), %s1167_s8, 4294967168  ;;  %s20_s17 = sadd.s32 1, %s1763_s17   ;;  %s2184_s12 = smov %s1747_s13 }
 0x365   : > { %p17_p11 = scmp.ge.s32.totalorder %s20_s17, 4   ;;  %s2185_s13 = smov %s1751_s14 }
 0x366   : > { %s2186_s14 = smov %s1941_s4  ;;  %s2187_s15 = smov %s1759_s16 }
 0x367   : > { %s2188_s16 = smov %s2190_s18  ;;  %19 = sbr.rel (!%p17_p11) target bundleno = 7 (0x7), region = 104 }
 0x36e   :  { %1172 = vsyncpa [#allocation3], 1 }
 0x36f   :  { %1174 = vsyncpa [#allocation3 + $0x1], 1 }
 0x370   :  { %1175 = vsyncpa [#allocation6], 1 }
 0x371   :  { %1176 = vsyncpa [#allocation4], 1 }
 0x372   :  { %1178 = vsyncpa [#allocation4 + $0x1], 1 }

</bundles_post_ra>
